<compile_context>
chip_gen: v6e
topology: v6e:2x2x1
jax: 0.10.0
libtpu: 0.0.40
codegen_flags: <defaults>
</compile_context>

<pallas_src>
import jax
import jax.numpy as jnp
from jax.experimental import pallas as pl
from jax.experimental.pallas import tpu as pltpu

LANES = 128
MAX_TILE_ROWS = 4096        # 4096*128*4B = 2 MiB per f32 input block
MXU_MIN_TILE_ROWS = 1024    # use the MXU ones-matmul reduction only in the
                            # streaming regime; tiny problems stay on the VPU


def _num_tensorcores() -> int:
    """Conservative TensorCore-per-chip count (2 only on v7x-like chips)."""
    try:
        info = pltpu.get_tpu_info()
        for name in ("num_tensorcores", "tensorcores_per_chip", "num_cores"):
            v = getattr(info, name, None)
            if isinstance(v, int) and 1 <= v <= 8:
                return min(v, 2)
    except Exception:
        pass
    try:
        kind = jax.devices()[0].device_kind.lower()
        if "v7" in kind:
            return 2
    except Exception:
        pass
    return 1


def _make_dice_kernel(tile_rows, tail_rows, total_tiles, tiles_per_shard,
                      num_shards, use_mxu):
    has_partial_tail = tail_rows != tile_rows
    may_overshoot = num_shards * tiles_per_shard > total_tiles
    # Index (exclusive) of the last tile that is guaranteed fully valid.
    last_full_end = total_tiles - 1 if has_partial_tail else total_tiles
    # MXU path accumulates the same column sums into all 8 sublane rows.
    acc_scale = 0.125 if use_mxu else 1.0
    hp = jax.lax.Precision.HIGHEST

    def kernel(x_ref, t_ref, o_ref, acc_i_ref, acc_u_ref):
        s = pl.program_id(0)          # shard (core-parallel on 2-TC chips)
        i = pl.program_id(1)          # tile within shard (sequential)
        g = s * tiles_per_shard + i   # global tile index (may overshoot)

        @pl.when(i == 0)
        def _():
            acc_i_ref[...] = jnp.zeros_like(acc_i_ref)
            acc_u_ref[...] = jnp.zeros_like(acc_u_ref)

        def accumulate(nrows):
            # nrows is static (tile_rows or tail_rows), always a multiple of 8,
            # so this is a free sub-view of the VMEM block: no mask needed.
            x = x_ref[:nrows, :].astype(jnp.float32)
            t = t_ref[:nrows, :].astype(jnp.float32)
            prod = x * t
            if use_mxu:
                # Column reductions on the otherwise-idle MXU:
                #   ones(8, R) @ A -> (8, 128), every row = column sums of A.
                # precision=HIGHEST keeps f32 operands exact (multi-pass);
                # the 8x redundancy is divided out exactly at finalize.
                ones_r = jnp.ones((8, nrows), jnp.float32)
                acc_i_ref[...] += jnp.dot(ones_r, prod,
                                          preferred_element_type=jnp.float32,
                                          precision=hp)
                acc_u_ref[...] += (
                    jnp.dot(ones_r, x, preferred_element_type=jnp.float32,
                            precision=hp)
                    + jnp.dot(ones_r, t, preferred_element_type=jnp.float32,
                              precision=hp))
            else:
                # Exact VPU path for small tiles: fold into vreg-shaped
                # (8, 128) accumulators with pure elementwise adds.
                acc_i_ref[...] += jnp.sum(
                    prod.reshape(nrows // 8, 8, LANES), axis=0)
                acc_u_ref[...] += jnp.sum(
                    (x + t).reshape(nrows // 8, 8, LANES), axis=0)

        # Hot path: fully valid tiles, zero masking work.
        if has_partial_tail or may_overshoot:
            @pl.when(g < last_full_end)
            def _():
                accumulate(tile_rows)
        else:
            accumulate(tile_rows)

        # The single partial trailing tile (static row count, no iota/where).
        if has_partial_tail:
            @pl.when(g == total_tiles - 1)
            def _():
                accumulate(tail_rows)

        # Over-range steps (g >= total_tiles, only possible with an uneven
        # shard split) fall through both branches and contribute nothing.

        # Single cross-lane reduction per shard.
        @pl.when(i == tiles_per_shard - 1)
        def _():
            o_ref[0, 0] = jnp.sum(acc_i_ref[...]) * acc_scale
            o_ref[0, 1] = jnp.sum(acc_u_ref[...]) * acc_scale

    return kernel


def dice_loss(inputs: jax.Array, targets: jax.Array) -> jax.Array:
    """Pallas TPU DiceLoss.forward (scalar f32 output)."""
    assert inputs.shape == targets.shape
    x_flat = inputs.reshape(-1)
    t_flat = targets.reshape(-1)
    n = x_flat.shape[0]

    # Sublane-row alignment for the native packed layout of the narrowest
    # input dtype: f32 -> 8 rows, bf16 -> 16, 1-byte -> 32.
    def _sublane_rows(dt):
        return 8 * max(1, 4 // max(1, jnp.dtype(dt).itemsize))
    align_rows = max(_sublane_rows(inputs.dtype), _sublane_rows(targets.dtype))
    align_elems = align_rows * LANES

    # Kernel runs on the aligned prefix (no jnp.pad full-array copies); the
    # < align_elems remainder is added with plain jnp below.
    n_main = (n // align_elems) * align_elems
    rows = n_main // LANES

    inter = jnp.float32(0.0)
    union = jnp.float32(0.0)

    if rows > 0:
        if n_main == n:
            x2 = x_flat.reshape(rows, LANES)      # free bitcast reshape
            t2 = t_flat.reshape(rows, LANES)
        else:
            x2 = x_flat[:n_main].reshape(rows, LANES)
            t2 = t_flat[:n_main].reshape(rows, LANES)

        tile_rows = min(MAX_TILE_ROWS, rows)      # multiple of align_rows
        total_tiles = pl.cdiv(rows, tile_rows)
        tail_rows = rows - (total_tiles - 1) * tile_rows   # multiple of 8

        num_tc = _num_tensorcores()
        num_shards = 2 if (num_tc >= 2 and total_tiles >= 2) else 1
        tiles_per_shard = pl.cdiv(total_tiles, num_shards)
        use_mxu = tile_rows >= MXU_MIN_TILE_ROWS

        kernel = _make_dice_kernel(tile_rows, tail_rows, total_tiles,
                                   tiles_per_shard, num_shards, use_mxu)

        # Clamp the block index so an uneven shard split never issues an
        # out-of-range DMA; the clamped re-read contributes nothing.
        def in_map(s, i):
            return (jnp.minimum(s * tiles_per_shard + i, total_tiles - 1), 0)

        if num_shards > 1:
            dims = (getattr(pltpu, "CORE_PARALLEL", pltpu.PARALLEL),
                    pltpu.ARBITRARY)
        else:
            dims = (pltpu.ARBITRARY, pltpu.ARBITRARY)

        bytes_accessed = (x2.size * x2.dtype.itemsize
                          + t2.size * t2.dtype.itemsize
                          + num_shards * 2 * 4)
        cost = pl.CostEstimate(flops=3 * n_main, transcendentals=0,
                               bytes_accessed=bytes_accessed)

        parts = pl.pallas_call(
            kernel,
            out_shape=jax.ShapeDtypeStruct((num_shards, 2), jnp.float32),
            grid_spec=pltpu.PrefetchScalarGridSpec(
                num_scalar_prefetch=0,
                grid=(num_shards, tiles_per_shard),
                in_specs=[
                    pl.BlockSpec((tile_rows, LANES), in_map),
                    pl.BlockSpec((tile_rows, LANES), in_map),
                ],
                out_specs=pl.BlockSpec((1, 2), lambda s, i: (s, 0),
                                       memory_space=pltpu.SMEM),
                scratch_shapes=[
                    pltpu.VMEM((8, LANES), jnp.float32),
                    pltpu.VMEM((8, LANES), jnp.float32),
                ],
            ),
            compiler_params=pltpu.CompilerParams(dimension_semantics=dims),
            cost_estimate=cost,
        )(x2, t2)

        inter = inter + jnp.sum(parts[:, 0])
        union = union + jnp.sum(parts[:, 1])

    if n_main != n:
        # < align_elems trailing elements: trivial jnp epilogue, no big copies.
        xr = x_flat[n_main:].astype(jnp.float32)
        tr = t_flat[n_main:].astype(jnp.float32)
        inter = inter + jnp.sum(xr * tr)
        union = union + jnp.sum(xr) + jnp.sum(tr)

    dice = 2.0 * inter / (union + 1e-8)
    return 1.0 - dice


def _dice_loss_ref(inputs, targets):
    inter = jnp.sum(inputs * targets)
    union = jnp.sum(inputs) + jnp.sum(targets)
    return 1.0 - 2.0 * inter / (union + 1e-8)


if __name__ == "__main__":
    key = jax.random.PRNGKey(0)
    k1, k2 = jax.random.split(key)
    # Typical segmentation shapes: NCHW probabilities and binary targets.
    inputs = jax.nn.sigmoid(jax.random.normal(k1, (2, 4, 16, 16), jnp.float32))
    targets = (jax.random.uniform(k2, (2, 4, 16, 16)) > 0.5).astype(jnp.float32)

    loss = jax.block_until_ready(jax.jit(dice_loss)(inputs, targets))
    ref = _dice_loss_ref(inputs, targets)
    assert jnp.allclose(loss, ref, atol=1e-5, rtol=1e-5), (loss, ref)
    print("KERNEL_OK")
</pallas_src>

<mosaic_0001>
module attributes {stable_mosaic.version = 11 : i64} {
  func.func @kernel(%arg0: i32, %arg1: i32, %arg2: memref<16x128xf32, #tpu.memory_space<vmem>>, %arg3: memref<16x128xf32, #tpu.memory_space<vmem>>, %arg4: memref<1x2xf32, #tpu.memory_space<smem>>, %arg5: memref<8x128xf32, #tpu.memory_space<vmem>>, %arg6: memref<8x128xf32, #tpu.memory_space<vmem>>) attributes {dimension_semantics = [#tpu.dimension_semantics<arbitrary>, #tpu.dimension_semantics<arbitrary>], iteration_bounds = array<i64: 1, 1>, scalar_prefetch = 0 : i64, scratch_operands = 2 : i64, tpu.core_type = #tpu.core_type<tc>, window_params = [{transform_indices = @transform_0, window_bounds = array<i64: 16, 128>}, {transform_indices = @transform_1, window_bounds = array<i64: 16, 128>}, {transform_indices = @transform_2, window_bounds = array<i64: 1, 2>}]} {
    %c0_i32 = arith.constant 0 : i32
    %0 = arith.cmpi eq, %arg1, %c0_i32 : i32
    %1 = arith.extui %0 : i1 to i32
    %c0_i32_0 = arith.constant 0 : i32
    %2 = arith.cmpi ne, %1, %c0_i32_0 : i32
    scf.if %2 {
      %cst_15 = arith.constant 0.000000e+00 : f32
      %20 = vector.broadcast %cst_15 : f32 to vector<8x128xf32>
      %c0_16 = arith.constant 0 : index
      %c0_17 = arith.constant 0 : index
      %21 = vector.load %arg5[%c0_16, %c0_17] : memref<8x128xf32, #tpu.memory_space<vmem>>, vector<8x128xf32>
      tpu.vector_store %arg5[%c0_16, %c0_17], %20 {strides = array<i32>} : memref<8x128xf32, #tpu.memory_space<vmem>>, vector<8x128xf32>,
      %cst_18 = arith.constant 0.000000e+00 : f32
      %22 = vector.broadcast %cst_18 : f32 to vector<8x128xf32>
      %c0_19 = arith.constant 0 : index
      %c0_20 = arith.constant 0 : index
      %23 = vector.load %arg6[%c0_19, %c0_20] : memref<8x128xf32, #tpu.memory_space<vmem>>, vector<8x128xf32>
      tpu.vector_store %arg6[%c0_19, %c0_20], %22 {strides = array<i32>} : memref<8x128xf32, #tpu.memory_space<vmem>>, vector<8x128xf32>,
    } else {
    }
    %c0 = arith.constant 0 : index
    %c0_1 = arith.constant 0 : index
    %3 = vector.load %arg2[%c0, %c0_1] : memref<16x128xf32, #tpu.memory_space<vmem>>, vector<16x128xf32>
    %c0_2 = arith.constant 0 : index
    %c0_3 = arith.constant 0 : index
    %4 = vector.load %arg3[%c0_2, %c0_3] : memref<16x128xf32, #tpu.memory_space<vmem>>, vector<16x128xf32>
    %5 = arith.mulf %3, %4 : vector<16x128xf32>
    %c0_4 = arith.constant 0 : index
    %c0_5 = arith.constant 0 : index
    %6 = vector.load %arg5[%c0_4, %c0_5] : memref<8x128xf32, #tpu.memory_space<vmem>>, vector<8x128xf32>
    %7 = vector.shape_cast %5 : vector<16x128xf32> to vector<2x8x128xf32>
    %cst = arith.constant dense<0.000000e+00> : vector<8x128xf32>
    %8 = vector.multi_reduction <add>, %7, %cst [0] : vector<2x8x128xf32> to vector<8x128xf32>
    %9 = arith.addf %6, %8 : vector<8x128xf32>
    %c0_6 = arith.constant 0 : index
    %c0_7 = arith.constant 0 : index
    %10 = vector.load %arg5[%c0_6, %c0_7] : memref<8x128xf32, #tpu.memory_space<vmem>>, vector<8x128xf32>
    tpu.vector_store %arg5[%c0_6, %c0_7], %9 {strides = array<i32>} : memref<8x128xf32, #tpu.memory_space<vmem>>, vector<8x128xf32>,
    %c0_8 = arith.constant 0 : index
    %c0_9 = arith.constant 0 : index
    %11 = vector.load %arg6[%c0_8, %c0_9] : memref<8x128xf32, #tpu.memory_space<vmem>>, vector<8x128xf32>
    %12 = arith.addf %3, %4 : vector<16x128xf32>
    %13 = vector.shape_cast %12 : vector<16x128xf32> to vector<2x8x128xf32>
    %cst_10 = arith.constant dense<0.000000e+00> : vector<8x128xf32>
    %14 = vector.multi_reduction <add>, %13, %cst_10 [0] : vector<2x8x128xf32> to vector<8x128xf32>
    %15 = arith.addf %11, %14 : vector<8x128xf32>
    %c0_11 = arith.constant 0 : index
    %c0_12 = arith.constant 0 : index
    %16 = vector.load %arg6[%c0_11, %c0_12] : memref<8x128xf32, #tpu.memory_space<vmem>>, vector<8x128xf32>
    tpu.vector_store %arg6[%c0_11, %c0_12], %15 {strides = array<i32>} : memref<8x128xf32, #tpu.memory_space<vmem>>, vector<8x128xf32>,
    %c0_i32_13 = arith.constant 0 : i32
    %17 = arith.cmpi eq, %arg1, %c0_i32_13 : i32
    %18 = arith.extui %17 : i1 to i32
    %c0_i32_14 = arith.constant 0 : i32
    %19 = arith.cmpi ne, %18, %c0_i32_14 : i32
    scf.if %19 {
      %c0_15 = arith.constant 0 : index
      %c0_16 = arith.constant 0 : index
      %20 = vector.load %arg5[%c0_15, %c0_16] : memref<8x128xf32, #tpu.memory_space<vmem>>, vector<8x128xf32>
      %21 = vector.shape_cast %20 : vector<8x128xf32> to vector<1x8x128xf32>
      %cst_17 = arith.constant dense<0.000000e+00> : vector<1xf32>
      %22 = vector.multi_reduction <add>, %21, %cst_17 [1, 2] : vector<1x8x128xf32> to vector<1xf32>
      %23 = vector.shape_cast %22 : vector<1xf32> to vector<1x1x1xf32>
      %24 = vector.extract %23[0, 0, 0] : f32 from vector<1x1x1xf32>
      %cst_18 = arith.constant 1.000000e+00 : f32
      %25 = arith.mulf %24, %cst_18 : f32
      %c0_19 = arith.constant 0 : index
      %c0_20 = arith.constant 0 : index
      %26 = memref.load %arg4[%c0_19, %c0_20] : memref<1x2xf32, #tpu.memory_space<smem>>
      memref.store %25, %arg4[%c0_19, %c0_20] : memref<1x2xf32, #tpu.memory_space<smem>>
      %c0_21 = arith.constant 0 : index
      %c0_22 = arith.constant 0 : index
      %27 = vector.load %arg6[%c0_21, %c0_22] : memref<8x128xf32, #tpu.memory_space<vmem>>, vector<8x128xf32>
      %28 = vector.shape_cast %27 : vector<8x128xf32> to vector<1x8x128xf32>
      %cst_23 = arith.constant dense<0.000000e+00> : vector<1xf32>
      %29 = vector.multi_reduction <add>, %28, %cst_23 [1, 2] : vector<1x8x128xf32> to vector<1xf32>
      %30 = vector.shape_cast %29 : vector<1xf32> to vector<1x1x1xf32>
      %31 = vector.extract %30[0, 0, 0] : f32 from vector<1x1x1xf32>
      %cst_24 = arith.constant 1.000000e+00 : f32
      %32 = arith.mulf %31, %cst_24 : f32
      %c0_25 = arith.constant 0 : index
      %c1 = arith.constant 1 : index
      %33 = memref.load %arg4[%c0_25, %c1] : memref<1x2xf32, #tpu.memory_space<smem>>
      memref.store %32, %arg4[%c0_25, %c1] : memref<1x2xf32, #tpu.memory_space<smem>>
    } else {
    }
    return
  }
  func.func @transform_0(%arg0: i32, %arg1: i32) -> (i32, i32) {
    %c1_i32 = arith.constant 1 : i32
    %0 = arith.muli %arg0, %c1_i32 : i32
    %1 = arith.addi %0, %arg1 : i32
    %c0_i32 = arith.constant 0 : i32
    %2 = arith.minsi %1, %c0_i32 : i32
    %c0_i32_0 = arith.constant 0 : i32
    %c0_i32_1 = arith.constant 0 : i32
    return %2, %c0_i32_0 : i32, i32
  }
  func.func @transform_1(%arg0: i32, %arg1: i32) -> (i32, i32) {
    %c1_i32 = arith.constant 1 : i32
    %0 = arith.muli %arg0, %c1_i32 : i32
    %1 = arith.addi %0, %arg1 : i32
    %c0_i32 = arith.constant 0 : i32
    %2 = arith.minsi %1, %c0_i32 : i32
    %c0_i32_0 = arith.constant 0 : i32
    %c0_i32_1 = arith.constant 0 : i32
    return %2, %c0_i32_0 : i32, i32
  }
  func.func @transform_2(%arg0: i32, %arg1: i32) -> (i32, i32) {
    %c0_i32 = arith.constant 0 : i32
    %c0_i32_0 = arith.constant 0 : i32
    return %arg0, %c0_i32 : i32, i32
  }
}

</mosaic_0001>

<bundles_post_ra>
// kernel: dice_loss.1
= control target key start
LH: loop header
LB: loop body
LE: loop exit
PB: predicated region body
PF: predicated region fallthrough
CT: control target
= control target key end

     0   :  { %s202_s0 = inlined_call_operand.vmem [shape: f32[16,128], index: 0, kind: input, shape index: {}]   ;;  %s203_s1 = inlined_call_operand.vmem [shape: f32[16,128], index: 1, kind: input, shape index: {}]   ;;  %s204_s2 = inlined_call_operand.vmem [shape: f32[1,2], index: 2, kind: output, shape index: {}]  }
   0x1   :  { %v82_v0 = vld [vmem:[%s202_s0] sm:$0xff]  ;;  %v83_v1 = vld [vmem:[%s202_s0 + $0x8] sm:$0xff] }
   0x2   :  { %v84_v2 = vld [vmem:[%s203_s1] sm:$0xff]  ;;  %v85_v3 = vld [vmem:[%s203_s1 + $0x8] sm:$0xff] }
   0x3   :  { %v86_v4 = vmul.f32 %v84_v2, %v82_v0 }
   0x4   :  { %7 = vsyncpa [#allocation5], 0  ;;  %v87_v5 = vmul.f32 %v85_v3, %v83_v1  ;;  %v93_v6 = vadd.f32 %v84_v2, %v82_v0  ;;  %v94_v7 = vadd.f32 %v85_v3, %v83_v1  ;;  %s131_s18 = sshll.u32 %s204_s2, 4  ;;  %s132_s18 = int_to_ptr.vmem [resolvable:$true] %s131_s18 }
   0x5   :  { %s157_s20 = scalar_lea.vmem %s132_s18, 16  ;;  %p162_p1 = scmp.lt.s32.totalorder %s132_s18, %s132_s18 }
   0x6   :  { %v89_v8 = vadd.f32 %v87_v5, %v86_v4  ;;  %v95_v9 = vadd.f32 %v94_v7, %v93_v6  ;;  %p158_p0 = scmp.ne.s32.totalorder %s132_s18, %s157_s20  ;;  %p163_p2 = scmp.lt.s32.totalorder %s157_s20, %s157_s20 }
   0x8   :  { %102 = vadd.xlane.f32.xlu0 %v89_v8  ;;  %p164_p3 = por %p163_p2, %p162_p1 }
   0xa   :  { %p165_p4 = pnand %p164_p3, %p158_p0 }
   0xc   :  { %114 = vadd.xlane.f32.xlu0 %v95_v9 }
  0x91   :  { %v103_v10 = vpop.xlane.xlu0 %102 }
  0x92   :  { %v104_v11 = vrot.slane %v103_v10, 4 }
  0x94   :  { %v105_v12 = vadd.f32 %v104_v11, %v103_v10 }
  0x95   :  { %v115_v13 = vpop.xlane.xlu0 %114 }
  0x96   :  { %v106_v14 = vrot.slane %v105_v12, 2  ;;  %v116_v15 = vrot.slane %v115_v13, 4 }
  0x98   :  { %v117_v16 = vadd.f32 %v116_v15, %v115_v13  ;;  %v107_v17 = vadd.f32 %v106_v14, %v105_v12 }
  0x9a   :  { %v118_v18 = vrot.slane %v117_v16, 2  ;;  %v108_v19 = vrot.slane %v107_v17, 1 }
  0x9c   :  { %v119_v20 = vadd.f32 %v118_v18, %v117_v16  ;;  %v109_v21 = vadd.f32 %v108_v19, %v107_v17 }
  0x9e   :  { %152 = vpush %v109_v21  ;;  %v120_v22 = vrot.slane %v119_v20, 1 }
  0xa0   :  { %v121_v23 = vadd.f32 %v120_v22, %v119_v20 }
  0xa2   :  { %154 = vpush %v121_v23 }
  0xcf   :  { %s153_s0 = spop %152 }
  0xd0   :  { %112 = sst [smem:[#allocation4]] %s153_s0 }
  0xd3   :  { %s155_s19 = spop %154 }
  0xd4   :  { %124 = sst [smem:[#allocation4 + $0x1]] %s155_s19 }
  0xd5   :  { %168 = shalt.err (!%p165_p4)
}
  0xd6   :  { %s171_s21 = smov [#allocation4]  }
  0xd7   :  { %134 = dma.smem_to_vmem %s171_s21, 16, %s132_s18, [#allocation5]  }
  0xd8   :  { %169 = dma.done.wait [#allocation5], 16  }
  0xd9   :  { %170 = vsyncadd [#allocation5], 4294967280 }
  0xda   :  { %138 = sfence }
  0xdb   :  { %139 = vsyncpa [#allocation5], 1 }

</bundles_post_ra>
